<compile_context>
chip_gen: v6e
topology: v6e:2x2x1
jax: 0.10.0
libtpu: 0.0.40
codegen_flags: <defaults>
</compile_context>

<pallas_src>
import functools

import jax
import jax.numpy as jnp
from jax.experimental import pallas as pl
from jax.experimental.pallas import tpu as pltpu


def _multi_adj_gnn_kernel(x_ref, adjT_ref, w_ref, b_ref, o_ref, *,
                          tb, n, c_in, num_supports, order):
    """One grid step processes TB (b,t) slabs at once.

    x_ref   : (TB*N, C_in)    bf16, rows ordered (bt-local major, node minor)
    adjT_ref: (S, N, N)       bf16, pre-transposed adjacencies (A^T)
    w_ref   : (G, C_in, OP)   bf16, per-group 1x1-conv weight, OP = padded out
    b_ref   : (1, OP)         f32 bias (zero padded)
    o_ref   : (TB*N, OP)      f32 output block, lane-dense (OP % 128 == 0)
    """
    x2 = x_ref[...]                                   # (TB*N, C_in)
    x3 = x2.reshape(tb, n, c_in)                      # leading-dim split only

    # Direct term + bias: f32 accumulator, bias broadcast exactly once.
    y = jnp.dot(x2, w_ref[0], preferred_element_type=jnp.float32)
    y = y + b_ref[...]

    for s in range(num_supports):
        # A_s^T broadcast over the TB slabs -> one batched MXU matmul per hop.
        a_t = jnp.broadcast_to(adjT_ref[s][None, :, :], (tb, n, n))
        h = x3
        for k in range(order):
            # nconv hop: h'[b, w, c] = sum_v A[v, w] * h[b, v, c]
            hf = jnp.einsum('bwv,bvc->bwc', a_t, h,
                            preferred_element_type=jnp.float32)
            h = hf.astype(x3.dtype)                   # back to bf16 for the MXU
            g = 1 + s * order + k
            # 1x1-conv contribution of this feature group (no concat).
            y = y + jnp.dot(h.reshape(tb * n, c_in), w_ref[g],
                            preferred_element_type=jnp.float32)

    o_ref[...] = y.astype(o_ref.dtype)


def _pick_bt_tile(bt):
    """How many (b, t) slabs each grid step processes."""
    tb = min(128, bt)
    if bt >= 16:
        tb = min(tb, bt // 2)     # keep grid >= 2 steps (v7x has 2 TensorCores)
    if tb >= 8:
        tb -= tb % 8              # sublane-aligned row tile
    return max(tb, 1)


def multi_adj_gnn_forward(x_nchw, adjs, w_conv, b_conv, *, order,
                          bt_tile=None, compute_dtype=jnp.bfloat16):
    """x_nchw: (B, C_in, N, T); adjs: (S, N, N);
    w_conv: (out_dim, C_total, 1, 1); b_conv: (out_dim,)."""
    B, c_in, n_nodes, t_len = x_nchw.shape
    n_sup = adjs.shape[0]
    out_dim = w_conv.shape[0]
    groups = order * n_sup + 1
    c_total = c_in * groups
    assert w_conv.shape[1] == c_total
    bt = B * t_len

    # ---- tiling choices ----------------------------------------------------
    tb = _pick_bt_tile(bt) if bt_tile is None else bt_tile
    bt_pad = ((bt + tb - 1) // tb) * tb
    num_tiles = bt_pad // tb
    out_pad = ((out_dim + 127) // 128) * 128          # lane-dense output
    assert (tb * n_nodes) % 8 == 0, "row tile must be sublane aligned"

    # ---- glue: operand re-layout (plain JAX, outside the kernel) ------------
    # TODO(synk): in a full model these NCHW <-> (B*T*N, C) relayouts would be
    # avoided by keeping producer/consumer in the row-major layout end-to-end.
    x_rows = jnp.transpose(x_nchw, (0, 3, 2, 1)).reshape(bt, n_nodes, c_in)
    if bt_pad != bt:
        x_rows = jnp.pad(x_rows, ((0, bt_pad - bt), (0, 0), (0, 0)))
    x2d = x_rows.reshape(bt_pad * n_nodes, c_in).astype(compute_dtype)

    adjs_t = jnp.transpose(adjs, (0, 2, 1)).astype(compute_dtype)   # A^T per support

    w = w_conv.reshape(out_dim, c_total).T                          # (C_total, out)
    w = jnp.pad(w, ((0, 0), (0, out_pad - out_dim)))
    w = w.reshape(groups, c_in, out_pad).astype(compute_dtype)

    b = jnp.pad(b_conv, (0, out_pad - out_dim)).reshape(1, out_pad)
    b = b.astype(jnp.float32)

    kernel = functools.partial(_multi_adj_gnn_kernel, tb=tb, n=n_nodes,
                               c_in=c_in, num_supports=n_sup, order=order)

    y2d = pl.pallas_call(
        kernel,
        out_shape=jax.ShapeDtypeStruct((bt_pad * n_nodes, out_pad), jnp.float32),
        grid_spec=pltpu.PrefetchScalarGridSpec(
            num_scalar_prefetch=0,
            grid=(num_tiles,),
            in_specs=[
                pl.BlockSpec((tb * n_nodes, c_in), lambda i: (i, 0)),
                pl.BlockSpec((n_sup, n_nodes, n_nodes), lambda i: (0, 0, 0)),
                pl.BlockSpec((groups, c_in, out_pad), lambda i: (0, 0, 0)),
                pl.BlockSpec((1, out_pad), lambda i: (0, 0)),
            ],
            out_specs=pl.BlockSpec((tb * n_nodes, out_pad), lambda i: (i, 0)),
        ),
        compiler_params=pltpu.CompilerParams(
            dimension_semantics=("parallel",),
            vmem_limit_bytes=48 * 1024 * 1024,   # headroom below v7x's 64 MiB
        ),
    )(x2d, adjs_t, w, b)

    # ---- glue: back to NCHW, drop padding ------------------------------------
    y = y2d.reshape(bt_pad, n_nodes, out_pad)[:bt, :, :out_dim]
    return jnp.transpose(y.reshape(B, t_len, n_nodes, out_dim), (0, 3, 2, 1))


def reference_forward(x_nchw, adjs, w_conv, b_conv, *, order):
    """Pure-JAX (f32) mirror of the PyTorch forward (eval mode)."""
    feats = [x_nchw]
    for s in range(adjs.shape[0]):
        A = adjs[s]
        h = x_nchw
        for _ in range(order):
            h = jnp.einsum('ncvl,vw->ncwl', h, A)      # nconv hop
            feats.append(h)
    cat = jnp.concatenate(feats, axis=1)
    w = w_conv.reshape(w_conv.shape[0], w_conv.shape[1])
    y = jnp.einsum('ncvl,oc->novl', cat, w) + b_conv[None, :, None, None]
    return y


if __name__ == "__main__":
    # small shapes consistent with the module
    B, C_IN, N, T = 2, 4, 16, 8
    NUM_SUPPORTS, ORDER, OUT_DIM = 2, 2, 32
    C_TOTAL = C_IN * (ORDER * NUM_SUPPORTS + 1)

    key = jax.random.PRNGKey(0)
    kx, ka, kw, kb = jax.random.split(key, 4)

    x = jax.random.normal(kx, (B, C_IN, N, T), dtype=jnp.float32)
    adjs = jax.random.uniform(ka, (NUM_SUPPORTS, N, N), dtype=jnp.float32)
    adjs = adjs / jnp.sum(adjs, axis=-1, keepdims=True)      # row-normalized
    w_conv = 0.1 * jax.random.normal(kw, (OUT_DIM, C_TOTAL, 1, 1),
                                     dtype=jnp.float32)
    b_conv = 0.1 * jax.random.normal(kb, (OUT_DIM,), dtype=jnp.float32)

    y = multi_adj_gnn_forward(x, adjs, w_conv, b_conv, order=ORDER)
    y = jax.block_until_ready(y)

    y_ref = reference_forward(x, adjs, w_conv, b_conv, order=ORDER)
    assert y.shape == (B, OUT_DIM, N, T)
    # bf16 MXU operands with f32 accumulation -> loosened tolerance vs f32 ref.
    max_err = float(jnp.max(jnp.abs(y - y_ref)))
    assert jnp.allclose(y, y_ref, atol=3e-2, rtol=3e-2), max_err

    print("KERNEL_OK")
</pallas_src>

<mosaic_0001>
module attributes {stable_mosaic.version = 11 : i64} {
  func.func @_multi_adj_gnn_kernel(%arg0: i32, %arg1: memref<128x4xbf16, #tpu.memory_space<vmem>>, %arg2: memref<2x16x16xbf16, #tpu.memory_space<vmem>>, %arg3: memref<5x4x128xbf16, #tpu.memory_space<vmem>>, %arg4: memref<1x128xf32, #tpu.memory_space<vmem>>, %arg5: memref<128x128xf32, #tpu.memory_space<vmem>>) attributes {dimension_semantics = [#tpu.dimension_semantics<parallel>], iteration_bounds = array<i64: 2>, scalar_prefetch = 0 : i64, scratch_operands = 0 : i64, tpu.core_type = #tpu.core_type<tc>, window_params = [{transform_indices = @transform_0, window_bounds = array<i64: 128, 4>}, {pipeline_mode = #tpu.pipeline_mode<synchronous>, transform_indices = @transform_1, window_bounds = array<i64: 2, 16, 16>}, {pipeline_mode = #tpu.pipeline_mode<synchronous>, transform_indices = @transform_2, window_bounds = array<i64: 5, 4, 128>}, {pipeline_mode = #tpu.pipeline_mode<synchronous>, transform_indices = @transform_3, window_bounds = array<i64: 1, 128>}, {transform_indices = @transform_4, window_bounds = array<i64: 128, 128>}]} {
    %c0 = arith.constant 0 : index
    %c0_0 = arith.constant 0 : index
    %0 = vector.load %arg1[%c0, %c0_0] : memref<128x4xbf16, #tpu.memory_space<vmem>>, vector<128x4xbf16>
    %1 = vector.shape_cast %0 : vector<128x4xbf16> to vector<8x16x4xbf16>
    %c0_1 = arith.constant 0 : index
    %c0_2 = arith.constant 0 : index
    %c0_3 = arith.constant 0 : index
    %2 = vector.load %arg3[%c0_1, %c0_2, %c0_3] : memref<5x4x128xbf16, #tpu.memory_space<vmem>>, vector<1x4x128xbf16>
    %3 = vector.shape_cast %2 : vector<1x4x128xbf16> to vector<4x128xbf16>
    %cst = arith.constant dense<0.000000e+00> : vector<128x128xf32>
    %4 = tpu.matmul %0, %3, %cst {dimension_numbers = #tpu.dot_dimension_numbers<[1], [0], [0], [1], [0, 0, 1, 1], [], []>} : vector<128x4xbf16>, vector<4x128xbf16>, vector<128x128xf32> -> vector<128x128xf32>
    %c0_4 = arith.constant 0 : index
    %c0_5 = arith.constant 0 : index
    %5 = vector.load %arg4[%c0_4, %c0_5] : memref<1x128xf32, #tpu.memory_space<vmem>>, vector<1x128xf32>
    %6 = vector.broadcast %5 : vector<1x128xf32> to vector<128x128xf32>
    %7 = arith.addf %4, %6 : vector<128x128xf32>
    %c0_6 = arith.constant 0 : index
    %c0_7 = arith.constant 0 : index
    %c0_8 = arith.constant 0 : index
    %8 = vector.load %arg2[%c0_6, %c0_7, %c0_8] : memref<2x16x16xbf16, #tpu.memory_space<vmem>>, vector<1x16x16xbf16>
    %9 = vector.shape_cast %8 : vector<1x16x16xbf16> to vector<16x16xbf16>
    %10 = vector.shape_cast %9 : vector<16x16xbf16> to vector<1x16x16xbf16>
    %11 = vector.shape_cast %10 : vector<1x16x16xbf16> to vector<1x16x16xbf16>
    %12 = vector.broadcast %11 : vector<1x16x16xbf16> to vector<8x16x16xbf16>
    "tpu.trace_start"() <{level = 10 : i32, message = "bwv,bvc->bwc"}> : () -> ()
    %cst_9 = arith.constant dense<0.000000e+00> : vector<8x16x4xf32>
    %13 = tpu.matmul %12, %1, %cst_9 {dimension_numbers = #tpu.dot_dimension_numbers<[2], [1], [1], [2], [0, 0, 0, 1, 1, 2], [0], [0]>} : vector<8x16x16xbf16>, vector<8x16x4xbf16>, vector<8x16x4xf32> -> vector<8x16x4xf32>
    "tpu.trace_stop"() : () -> ()
    %14 = arith.truncf %13 : vector<8x16x4xf32> to vector<8x16x4xbf16>
    %15 = vector.shape_cast %14 : vector<8x16x4xbf16> to vector<128x4xbf16>
    %c1 = arith.constant 1 : index
    %c0_10 = arith.constant 0 : index
    %c0_11 = arith.constant 0 : index
    %16 = vector.load %arg3[%c1, %c0_10, %c0_11] : memref<5x4x128xbf16, #tpu.memory_space<vmem>>, vector<1x4x128xbf16>
    %17 = vector.shape_cast %16 : vector<1x4x128xbf16> to vector<4x128xbf16>
    %cst_12 = arith.constant dense<0.000000e+00> : vector<128x128xf32>
    %18 = tpu.matmul %15, %17, %cst_12 {dimension_numbers = #tpu.dot_dimension_numbers<[1], [0], [0], [1], [0, 0, 1, 1], [], []>} : vector<128x4xbf16>, vector<4x128xbf16>, vector<128x128xf32> -> vector<128x128xf32>
    %19 = arith.addf %7, %18 : vector<128x128xf32>
    "tpu.trace_start"() <{level = 10 : i32, message = "bwv,bvc->bwc"}> : () -> ()
    %cst_13 = arith.constant dense<0.000000e+00> : vector<8x16x4xf32>
    %20 = tpu.matmul %12, %14, %cst_13 {dimension_numbers = #tpu.dot_dimension_numbers<[2], [1], [1], [2], [0, 0, 0, 1, 1, 2], [0], [0]>} : vector<8x16x16xbf16>, vector<8x16x4xbf16>, vector<8x16x4xf32> -> vector<8x16x4xf32>
    "tpu.trace_stop"() : () -> ()
    %21 = arith.truncf %20 : vector<8x16x4xf32> to vector<8x16x4xbf16>
    %22 = vector.shape_cast %21 : vector<8x16x4xbf16> to vector<128x4xbf16>
    %c2 = arith.constant 2 : index
    %c0_14 = arith.constant 0 : index
    %c0_15 = arith.constant 0 : index
    %23 = vector.load %arg3[%c2, %c0_14, %c0_15] : memref<5x4x128xbf16, #tpu.memory_space<vmem>>, vector<1x4x128xbf16>
    %24 = vector.shape_cast %23 : vector<1x4x128xbf16> to vector<4x128xbf16>
    %cst_16 = arith.constant dense<0.000000e+00> : vector<128x128xf32>
    %25 = tpu.matmul %22, %24, %cst_16 {dimension_numbers = #tpu.dot_dimension_numbers<[1], [0], [0], [1], [0, 0, 1, 1], [], []>} : vector<128x4xbf16>, vector<4x128xbf16>, vector<128x128xf32> -> vector<128x128xf32>
    %26 = arith.addf %19, %25 : vector<128x128xf32>
    %c1_17 = arith.constant 1 : index
    %c0_18 = arith.constant 0 : index
    %c0_19 = arith.constant 0 : index
    %27 = vector.load %arg2[%c1_17, %c0_18, %c0_19] : memref<2x16x16xbf16, #tpu.memory_space<vmem>>, vector<1x16x16xbf16>
    %28 = vector.shape_cast %27 : vector<1x16x16xbf16> to vector<16x16xbf16>
    %29 = vector.shape_cast %28 : vector<16x16xbf16> to vector<1x16x16xbf16>
    %30 = vector.shape_cast %29 : vector<1x16x16xbf16> to vector<1x16x16xbf16>
    %31 = vector.broadcast %30 : vector<1x16x16xbf16> to vector<8x16x16xbf16>
    "tpu.trace_start"() <{level = 10 : i32, message = "bwv,bvc->bwc"}> : () -> ()
    %cst_20 = arith.constant dense<0.000000e+00> : vector<8x16x4xf32>
    %32 = tpu.matmul %31, %1, %cst_20 {dimension_numbers = #tpu.dot_dimension_numbers<[2], [1], [1], [2], [0, 0, 0, 1, 1, 2], [0], [0]>} : vector<8x16x16xbf16>, vector<8x16x4xbf16>, vector<8x16x4xf32> -> vector<8x16x4xf32>
    "tpu.trace_stop"() : () -> ()
    %33 = arith.truncf %32 : vector<8x16x4xf32> to vector<8x16x4xbf16>
    %34 = vector.shape_cast %33 : vector<8x16x4xbf16> to vector<128x4xbf16>
    %c3 = arith.constant 3 : index
    %c0_21 = arith.constant 0 : index
    %c0_22 = arith.constant 0 : index
    %35 = vector.load %arg3[%c3, %c0_21, %c0_22] : memref<5x4x128xbf16, #tpu.memory_space<vmem>>, vector<1x4x128xbf16>
    %36 = vector.shape_cast %35 : vector<1x4x128xbf16> to vector<4x128xbf16>
    %cst_23 = arith.constant dense<0.000000e+00> : vector<128x128xf32>
    %37 = tpu.matmul %34, %36, %cst_23 {dimension_numbers = #tpu.dot_dimension_numbers<[1], [0], [0], [1], [0, 0, 1, 1], [], []>} : vector<128x4xbf16>, vector<4x128xbf16>, vector<128x128xf32> -> vector<128x128xf32>
    %38 = arith.addf %26, %37 : vector<128x128xf32>
    "tpu.trace_start"() <{level = 10 : i32, message = "bwv,bvc->bwc"}> : () -> ()
    %cst_24 = arith.constant dense<0.000000e+00> : vector<8x16x4xf32>
    %39 = tpu.matmul %31, %33, %cst_24 {dimension_numbers = #tpu.dot_dimension_numbers<[2], [1], [1], [2], [0, 0, 0, 1, 1, 2], [0], [0]>} : vector<8x16x16xbf16>, vector<8x16x4xbf16>, vector<8x16x4xf32> -> vector<8x16x4xf32>
    "tpu.trace_stop"() : () -> ()
    %40 = arith.truncf %39 : vector<8x16x4xf32> to vector<8x16x4xbf16>
    %41 = vector.shape_cast %40 : vector<8x16x4xbf16> to vector<128x4xbf16>
    %c4 = arith.constant 4 : index
    %c0_25 = arith.constant 0 : index
    %c0_26 = arith.constant 0 : index
    %42 = vector.load %arg3[%c4, %c0_25, %c0_26] : memref<5x4x128xbf16, #tpu.memory_space<vmem>>, vector<1x4x128xbf16>
    %43 = vector.shape_cast %42 : vector<1x4x128xbf16> to vector<4x128xbf16>
    %cst_27 = arith.constant dense<0.000000e+00> : vector<128x128xf32>
    %44 = tpu.matmul %41, %43, %cst_27 {dimension_numbers = #tpu.dot_dimension_numbers<[1], [0], [0], [1], [0, 0, 1, 1], [], []>} : vector<128x4xbf16>, vector<4x128xbf16>, vector<128x128xf32> -> vector<128x128xf32>
    %45 = arith.addf %38, %44 : vector<128x128xf32>
    %c0_28 = arith.constant 0 : index
    %c0_29 = arith.constant 0 : index
    %46 = vector.load %arg5[%c0_28, %c0_29] : memref<128x128xf32, #tpu.memory_space<vmem>>, vector<128x128xf32>
    tpu.vector_store %arg5[%c0_28, %c0_29], %45 {strides = array<i32>} : memref<128x128xf32, #tpu.memory_space<vmem>>, vector<128x128xf32>,
    return
  }
  func.func @transform_0(%arg0: i32) -> (i32, i32) {
    %c0_i32 = arith.constant 0 : i32
    %c0_i32_0 = arith.constant 0 : i32
    return %arg0, %c0_i32 : i32, i32
  }
  func.func @transform_1(%arg0: i32) -> (i32, i32, i32) {
    %c0_i32 = arith.constant 0 : i32
    %c0_i32_0 = arith.constant 0 : i32
    %c0_i32_1 = arith.constant 0 : i32
    %c0_i32_2 = arith.constant 0 : i32
    return %c0_i32, %c0_i32_0, %c0_i32_1 : i32, i32, i32
  }
  func.func @transform_2(%arg0: i32) -> (i32, i32, i32) {
    %c0_i32 = arith.constant 0 : i32
    %c0_i32_0 = arith.constant 0 : i32
    %c0_i32_1 = arith.constant 0 : i32
    %c0_i32_2 = arith.constant 0 : i32
    return %c0_i32, %c0_i32_0, %c0_i32_1 : i32, i32, i32
  }
  func.func @transform_3(%arg0: i32) -> (i32, i32) {
    %c0_i32 = arith.constant 0 : i32
    %c0_i32_0 = arith.constant 0 : i32
    %c0_i32_1 = arith.constant 0 : i32
    return %c0_i32, %c0_i32_0 : i32, i32
  }
  func.func @transform_4(%arg0: i32) -> (i32, i32) {
    %c0_i32 = arith.constant 0 : i32
    %c0_i32_0 = arith.constant 0 : i32
    return %arg0, %c0_i32 : i32, i32
  }
}

</mosaic_0001>

<bundles_post_ra>
// kernel: tpu_custom_call.1
= control target key start
LH: loop header
LB: loop body
LE: loop exit
PB: predicated region body
PF: predicated region fallthrough
CT: control target
= control target key end

     0   :  { %9 = vsyncpa [#allocation3], 0  ;;  %s3663_s0 = inlined_call_operand.vmem [shape: bf16[256,4], index: 0, kind: input, shape index: {}]   ;;  %s3664_s1 = inlined_call_operand.vmem [shape: bf16[2,16,16], index: 1, kind: input, shape index: {}]   ;;  %s3665_s2 = inlined_call_operand.vmem [shape: bf16[5,4,128], index: 2, kind: input, shape index: {}]   ;;  %s3666_s3 = inlined_call_operand.vmem [shape: f32[1,128], index: 3, kind: input, shape index: {}]   ;;  %s3667_s4 = inlined_call_operand.hbm [shape: f32[256,128], index: 4, kind: output, shape index: {}]  }
   0x1   :  { %11 = vsyncpa [#allocation3 + $0x1], 0  ;;  %s3070_s15 = smov 0   ;;  %s3072_s16 = smov 0  }
   0x2   :  { %s3074_s17 = smov 0   ;;  %s3076_s18 = smov 0  }
   0x3 LB: > { %s3091_s19 = sadd.s32 4294967295, %s3038_s18   ;;  %s2424_s20 = sadd.s32 4294967294, %s3038_s18   ;;  %s3038_s18 = sphi %s3076_s18, %s3673_s18   ;;  %s3034_s17 = sphi %s3074_s17, %s3672_s17   ;;  %s3030_s16 = sphi %s3072_s16, %s3671_s16   ;;  %s3026_s15 = sphi %s3070_s15, %s3670_s15  }
   0x4   : > { %s3095_s21 = sadd.s32 1, %s3038_s18   ;;  %s113_s22 = sadd.s32 1, %s3034_s17 }
   0x5   : > { %s110_s23 = ssub.s32 %s3038_s18, %s3095_s21  ;;  %p123_p0 = scmp.ne.s32.totalorder %s3034_s17, %s3030_s16 }
   0x6   : > { %p111_p1 = scmp.eq.s32.totalorder %s110_s23, 0  ;;  %p124_p2 = scmp.eq.s32.totalorder %s3091_s19, 1 }
   0x7   : > { %p129_p3 = scmp.ne.s32.totalorder %s3030_s16, %s3026_s15  ;;  %p130_p4 = scmp.eq.s32.totalorder %s2424_s20, 1 }
   0x8   : > { %s3106_s24 = scalar_select %p111_p1, %s3034_s17, %s113_s22  }
   0x9   : > { %p3108_p5 = por %p124_p2, %p123_p0  ;;  %p3112_p6 = por %p130_p4, %p129_p3 }
   0xa   : > { %p2427_p7 = scmp.ge.s32.totalorder %s3038_s18, 1  ;;  %p166_p8 = scmp.lt.s32.totalorder %s3038_s18, 3 }
   0xc   : > { %p167_p9 = pnand %p2427_p7, %p166_p8 }
   0xd   : > { %s2429_s29 = sshll.u32 (!%p167_p9), %s3091_s19, 4  ;;  %s189_s5 = sand.u32 (!%p167_p9), 1, %s3030_s16  }
   0xe   : > { %170 = sbr.rel (%p167_p9) target bundleno = 1142 (0x476), region = 36  ;;  %p193_p10 = scmp.lt.s32.totalorder (!%p167_p9), %s2429_s29, 31 }
   0xf   : > { %s2428_s6 = sshll.u32 (!%p167_p9), %s189_s5, 7  ;;  %s2525_s8 = sshll.u32 (!%p167_p9), %s3091_s19, 11 }
  0x10   : > { %s3614_s12 = scalar_lea.hbm (!%p167_p9), %s3667_s4, %s2525_s8  ;;  %s3623_s19 = scalar_lea.sflag (!%p167_p9), [#allocation3], %s189_s5 }
  0x11   : > { %s3042_s14 = smov (!%p167_p9), [#allocation2]  }
  0x12   : > { %s2982_s20 = sshll.u32 (!%p167_p9), %s3042_s14, 4  ;;  %s2983_s20 = int_to_ptr.vmem [resolvable:$false] %s2982_s20 }
  0x13   : > { %v216_v0 = vld [vmem:[%s3665_s2] sm:$0x3]  ;;  %vm289_vm0 = vcmask 1041408   ;;  %s3675_s29 = smov (!%p193_p10, %s2429_s29), 31  ;;  %v3040_v2 = vmov 0.0   ;;  %vm264_vm1 = vcmask 31744  }
  0x14   : > { %2920 = vmatprep.subr.msk.bf16.mxu1 %vm289_vm0, %v216_v0  ;;  %v291_v1 = vsel %vm289_vm0, %v216_v0, 0  ;;  %2919 = vmatprep.subr.msk.bf16.mxu0 %vm289_vm0, %v216_v0  ;;  %s2430_s30 = sshll.u32 %s3675_s29, 2  ;;  %vm3041_vm2 = vmmov 0   ;;  %v3169_v11 = vld [vmem:[%s3664_s1] sm:$0xff]   ;;  %vm398_vm3 = vcmask 130048   ;;  %s2984_s22 = scalar_lea.vmem %s2983_s20, 4096 }
  0x15   : > { %2918 = vmatpush3.bf16.msra.mxu1 %v291_v1  ;;  %2636 = vmatpush3.bf16.msra.mxu0 %v291_v1  ;;  %s196_s7 = scalar_lea.vmem %s3663_s0, %s2430_s30  ;;  %v2457_v12 = vld [vmem:[%s3665_s2 + $0x2] sm:$0x3]  ;;  %v3225_v14 = vld [vmem:[%s3666_s3] ss:$0 sm:$0xff] }
  0x16   : > { %2653 = vmatprep.subr.bf16.mxu1 %v3040_v2  ;;  %2677 = vmatprep.subr.bf16.mxu0 %v3040_v2  ;;  %v3130_v3 = vld [vmem:[%s196_s7 + $0x20] sm:$0xff]   ;;  %v3132_v4 = vld [vmem:[%s196_s7 + $0x28] sm:$0xff]   ;;  %v3136_v5 = vld [vmem:[%s196_s7 + $0x30] sm:$0xff]   ;;  %v772_v13 = vsel %vm289_vm0, %v2457_v12, 0 }
  0x17   : > { %2645 = vmatprep.mubr.msk.bf16.mxu1 %vm264_vm1, %v3130_v3  ;;  %v3142_v6 = vld [vmem:[%s196_s7] sm:$0xff]   ;;  %v3144_v7 = vld [vmem:[%s196_s7 + $0x8] sm:$0xff]   ;;  %v3149_v8 = vld [vmem:[%s196_s7 + $0x10] sm:$0xff]  }
  0x18   : > { %2646 = vmatmul.mubr.msk.bf16.vlgmr.msra.gmra.mxu1 %vm264_vm1, %v3132_v4  ;;  %2637 = vmatprep.mubr.msk.bf16.mxu0 %vm264_vm1, %v3142_v6  ;;  %v3151_v9 = vld [vmem:[%s196_s7 + $0x38] sm:$0xff]  }
  0x19   : > { %2649 = vmatprep.mubr.msk.bf16.mxu1 %vm264_vm1, %v3136_v5  ;;  %2654 = vmatpush3.bf16.msra.mxu1 %v3142_v6  ;;  %v3162_v10 = vld [vmem:[%s196_s7 + $0x18] sm:$0xff]   ;;  %s3581_s7 = scalar_lea.vmem [#allocation2], %s2428_s6 }
  0x1a   : > { %2659 = vmatprep.subr.bf16.mxu1 %v3040_v2  ;;  %2638 = vmatmul.mubr.msk.bf16.vlgmr.msra.gmra.mxu0 %vm264_vm1, %v3144_v7  ;;  %s2362_s9 = sshll.u32 %s3581_s7, 4  ;;  %s3616_s9 = int_to_ptr.vmem [resolvable:$true] %s2362_s9 }
  0x1b   : > { %2641 = vmatprep.mubr.msk.bf16.mxu0 %vm264_vm1, %v3149_v8  ;;  %2678 = vmatpush3.bf16.msra.mxu0 %v3130_v3  ;;  %s2978_s13 = scalar_lea.vmem %s3616_s9, 2048  ;;  %p2985_p0 = scmp.lt.s32.totalorder %s3616_s9, %s2983_s20 }
  0x1c   : > { %2689 = vmatprep.subr.bf16.mxu0 %v3040_v2  ;;  %p2979_p11 = scmp.ne.s32.totalorder %s3616_s9, %s2978_s13  ;;  %p2986_p1 = scmp.lt.s32.totalorder %s2984_s22, %s2978_s13 }
  0x1e   : > { %p2980_p12 = pnand %p2979_p11, %p3108_p5  ;;  %p2987_p2 = por %p2986_p1, %p2985_p0 }
  0x20   : > { %2650 = vmatmul.mubr.msk.bf16.gmra.mxu1 %vm264_vm1, %v3151_v9  ;;  %p2981_p13 = pneg %p2980_p12 }
  0x21   : > { %2655 = vmatprep.mubr.msk.bf16.mxu1 %vm3041_vm2, %v3040_v2 }
  0x22   : > { %2642 = vmatmul.mubr.msk.bf16.gmra.mxu0 %vm264_vm1, %v3162_v10  ;;  %p2988_p3 = pnand %p2987_p2, %p2981_p13 }
  0x23   : > { %2679 = vmatprep.mubr.msk.bf16.mxu0 %vm3041_vm2, %v3040_v2 }
  0x28   : > { %2656 = vmatmul.mubr.msk.bf16.vlgmr.msra.gmra.mxu1 %vm398_vm3, %v3169_v11 }
  0x29   : > { %2660 = vmatpush3.bf16.msra.mxu1 %v3144_v7  ;;  %2661 = vmatprep.mubr.msk.bf16.mxu1 %vm3041_vm2, %v3040_v2 }
  0x2a   : > { %2665 = vmatprep.subr.bf16.mxu1 %v3040_v2  ;;  %2680 = vmatmul.mubr.msk.bf16.vlgmr.msra.gmra.mxu0 %vm398_vm3, %v3169_v11 }
  0x2b   : > { %2690 = vmatpush3.bf16.msra.mxu0 %v3136_v5  ;;  %2691 = vmatprep.mubr.msk.bf16.mxu0 %vm3041_vm2, %v3040_v2 }
  0x2c   : > { %2921 = vmatprep.subr.msk.bf16.mxu0 %vm289_vm0, %v2457_v12 }
  0x30   : > { %2662 = vmatmul.mubr.msk.bf16.vlgmr.msra.gmra.mxu1 %vm398_vm3, %v3169_v11 }
  0x31   : > { %2666 = vmatpush3.bf16.msra.mxu1 %v3149_v8  ;;  %2667 = vmatprep.mubr.msk.bf16.mxu1 %vm3041_vm2, %v3040_v2 }
  0x32   : > { %2671 = vmatprep.subr.bf16.mxu1 %v3040_v2  ;;  %2692 = vmatmul.mubr.msk.bf16.vlgmr.msra.gmra.mxu0 %vm398_vm3, %v3169_v11 }
  0x33   : > { %2702 = vmatpush3.bf16.msra.mxu0 %v772_v13 }
  0x34   : > { %2743 = vmatprep.subr.bf16.mxu0 %v3040_v2 }
  0x38   : > { %2668 = vmatmul.mubr.msk.bf16.vlgmr.msra.gmra.mxu1 %vm398_vm3, %v3169_v11 }
  0x39   : > { %2672 = vmatpush3.bf16.msra.mxu1 %v3162_v10  ;;  %2673 = vmatprep.mubr.msk.bf16.mxu1 %vm3041_vm2, %v3040_v2 }
  0x3a   : > { %2683 = vmatprep.subr.bf16.mxu1 %v3040_v2 }
  0x40   : > { %2674 = vmatmul.mubr.msk.bf16.vlgmr.msra.gmra.mxu1 %vm398_vm3, %v3169_v11 }
  0x41   : > { %2684 = vmatpush3.bf16.msra.mxu1 %v3132_v4  ;;  %2685 = vmatprep.mubr.msk.bf16.mxu1 %vm3041_vm2, %v3040_v2 }
  0x42   : > { %2695 = vmatprep.subr.bf16.mxu1 %v3040_v2 }
  0x48   : > { %2686 = vmatmul.mubr.msk.bf16.vlgmr.msra.gmra.mxu1 %vm398_vm3, %v3169_v11 }
  0x49   : > { %2696 = vmatpush3.bf16.msra.mxu1 %v3151_v9  ;;  %2697 = vmatprep.mubr.msk.bf16.mxu1 %vm3041_vm2, %v3040_v2 }
  0x4a   : > { %2719 = vmatprep.subr.bf16.mxu1 %v3040_v2 }
  0x50   : > { %2698 = vmatmul.mubr.msk.bf16.vlgmr.msra.gmra.mxu1 %vm398_vm3, %v3169_v11 }
  0x51   : > { %2721 = vmatprep.mubr.msk.bf16.mxu1 %vm3041_vm2, %v3040_v2 }
  0xd8   : > { %v2647_v15 = vpop.f32.mrf.mxu1 }
  0xd9   : > { %v3228_v16 = vadd.f32 %v2647_v15, %v3225_v14 }
  0xda   : > { %v359_v17 = vpop.f32.mrf.mxu1  ;;  %v3233_v20 = vpop.f32.mrf.mxu0 }
  0xdb   : > { %v3231_v18 = vadd.f32 %v3225_v14, %v359_v17 }
  0xdc   : > { %v2648_v19 = vpop.f32.mrf.mxu1  ;;  %v3238_v23 = vpop.f32.mrf.mxu0 }
  0xdd   : > { %v3236_v21 = vadd.f32 %v2648_v19, %v3225_v14 }
  0xde   : > { %v362_v22 = vpop.f32.mrf.mxu1  ;;  %v3243_v26 = vpop.f32.mrf.mxu0 }
  0xdf   : > { %v3241_v24 = vadd.f32 %v3225_v14, %v362_v22 }
  0xe0   : > { %v2651_v25 = vpop.f32.mrf.mxu1  ;;  %v3248_v29 = vpop.f32.mrf.mxu0 }
  0xe1   : > { %v3246_v27 = vadd.f32 %v2651_v25, %v3225_v14 }
  0xe2   : > { %v375_v28 = vpop.f32.mrf.mxu1  ;;  %v3253_v32 = vpop.f32.mrf.mxu0 }
  0xe3   : > { %v3251_v30 = vadd.f32 %v3225_v14, %v375_v28 }
  0xe4   : > { %v2652_v31 = vpop.f32.mrf.mxu1  ;;  %v3258_v35 = vpop.f32.mrf.mxu0 }
  0xe5   : > { %v3256_v33 = vadd.f32 %v2652_v31, %v3225_v14 }
  0xe6   : > { %v378_v34 = vpop.f32.mrf.mxu1  ;;  %v3263_v38 = vpop.f32.mrf.mxu0 }
  0xe7   : > { %v3261_v36 = vadd.f32 %v3225_v14, %v378_v34 }
  0xe8   : > { %v436_v37 = vpop.f32.mrf.mxu1  ;;  %v3265_v40 = vpop.f32.mrf.mxu0 }
  0xea   : > { %v2657_v39 = vpop.f32.mrf.mxu1  ;;  %v604_v42 = vpop.f32.mrf.mxu0 }
  0xec   : > { %v439_v41 = vpop.f32.mrf.mxu1  ;;  %v2681_v45 = vpop.f32.mrf.mxu0 }
  0xed   : > { %v737_v43 = vpack.c.bf16 %v439_v41, %v436_v37 }
  0xee   : > { %v2658_v44 = vpop.f32.mrf.mxu1  ;;  %v607_v47 = vpop.f32.mrf.mxu0 }
  0xef   : > { %2703 = vmatprep.mubr.msk.bf16.mxu0 %vm264_vm1, %v737_v43  ;;  %2720 = vmatpush3.bf16.msra.mxu1 %v737_v43  ;;  %v741_v51 = vpack.c.bf16 %v607_v47, %v604_v42  ;;  %v3313_v42 = vld [vmem:[%s3664_s1 + $0x8] sm:$0xff]  }
  0xf0   : > { %v478_v46 = vpop.f32.mrf.mxu1  ;;  %2725 = vmatprep.subr.bf16.mxu1 %v3040_v2  ;;  %v2682_v49 = vpop.f32.mrf.mxu0 }
  0xf2   : > { %v2663_v48 = vpop.f32.mrf.mxu1  ;;  %2722 = vmatmul.mubr.msk.bf16.vlgmr.msra.gmra.mxu1 %vm398_vm3, %v3169_v11  ;;  %v688_v52 = vpop.f32.mrf.mxu0 }
  0xf3   : > { %2727 = vmatprep.mubr.msk.bf16.mxu1 %vm3041_vm2, %v3040_v2  ;;  %v339_v48 = vadd.f32 %v3243_v26, %v3225_v14 }
  0xf4   : > { %v481_v50 = vpop.f32.mrf.mxu1  ;;  %v2693_v55 = vpop.f32.mrf.mxu0 }
  0xf5   : > { %v738_v53 = vpack.c.bf16 %v481_v50, %v478_v46 }
  0xf6   : > { %v2664_v54 = vpop.f32.mrf.mxu1  ;;  %v691_v57 = vpop.f32.mrf.mxu0 }
  0xf7   : > { %2704 = vmatmul.mubr.msk.bf16.vlgmr.msra.gmra.mxu0 %vm264_vm1, %v738_v53  ;;  %2726 = vmatpush3.bf16.msra.mxu1 %v738_v53  ;;  %v743_v22 = vpack.c.bf16 %v691_v57, %v688_v52 }
  0xf8   : > { %v520_v56 = vpop.f32.mrf.mxu1  ;;  %2731 = vmatprep.subr.bf16.mxu1 %v3040_v2  ;;  %2744 = vmatpush3.bf16.msra.mxu0 %v741_v51  ;;  %v2694_v59 = vpop.f32.mrf.mxu0 }
  0xf9   : > { %2755 = vmatprep.subr.bf16.mxu0 %v3040_v2 }
  0xfa   : > { %v2669_v58 = vpop.f32.mrf.mxu1  ;;  %2728 = vmatmul.mubr.msk.bf16.vlgmr.msra.gmra.mxu1 %vm398_vm3, %v3169_v11 }
  0xfb   : > { %2733 = vmatprep.mubr.msk.bf16.mxu1 %vm3041_vm2, %v3040_v2 }
  0xfc   : > { %v523_v60 = vpop.f32.mrf.mxu1 }
  0xfd   : > { %v739_v61 = vpack.c.bf16 %v523_v60, %v520_v56 }
  0xfe   : > { %v2670_v62 = vpop.f32.mrf.mxu1 }
  0xff   : > { %2707 = vmatprep.mubr.msk.bf16.mxu0 %vm264_vm1, %v739_v61  ;;  %2732 = vmatpush3.bf16.msra.mxu1 %v739_v61  ;;  %v344_v62 = vadd.f32 %v3225_v14, %v3258_v35 }
 0x100   : > { %v562_v63 = vpop.f32.mrf.mxu1  ;;  %2737 = vmatprep.subr.bf16.mxu1 %v3040_v2 }
 0x102   : > { %v2675_v0 = vpop.f32.mrf.mxu1  ;;  %2734 = vmatmul.mubr.msk.bf16.vlgmr.msra.gmra.mxu1 %vm398_vm3, %v3169_v11 }
 0x103   : > { %2739 = vmatprep.mubr.msk.bf16.mxu1 %vm3041_vm2, %v3040_v2 }
 0x104   : > { %v565_v1 = vpop.f32.mrf.mxu1 }
 0x105   : > { %v740_v12 = vpack.c.bf16 %v565_v1, %v562_v63 }
 0x106   : > { %v2676_v13 = vpop.f32.mrf.mxu1 }
 0x107   : > { %2708 = vmatmul.mubr.msk.bf16.gmra.mxu0 %vm264_vm1, %v740_v12  ;;  %2738 = vmatpush3.bf16.msra.mxu1 %v740_v12 }
 0x108   : > { %v646_v15 = vpop.f32.mrf.mxu1  ;;  %2711 = vmatprep.mubr.msk.bf16.mxu0 %vm264_vm1, %v741_v51  ;;  %2749 = vmatprep.subr.bf16.mxu1 %v3040_v2 }
 0x10a   : > { %v2687_v17 = vpop.f32.mrf.mxu1  ;;  %2740 = vmatmul.mubr.msk.bf16.vlgmr.msra.gmra.mxu1 %vm398_vm3, %v3169_v11 }
 0x10b   : > { %2751 = vmatprep.mubr.msk.bf16.mxu1 %vm3041_vm2, %v3040_v2 }
 0x10c   : > { %v649_v19 = vpop.f32.mrf.mxu1 }
 0x10d   : > { %v742_v25 = vpack.c.bf16 %v649_v19, %v646_v15 }
 0x10e   : > { %v2688_v28 = vpop.f32.mrf.mxu1 }
 0x10f   : > { %2712 = vmatmul.mubr.msk.bf16.gmra.mxu0 %vm264_vm1, %v742_v25  ;;  %2750 = vmatpush3.bf16.msra.mxu1 %v742_v25 }
 0x110   : > { %v730_v31 = vpop.f32.mrf.mxu1  ;;  %2715 = vmatprep.mubr.msk.bf16.mxu0 %vm264_vm1, %v743_v22  ;;  %2761 = vmatprep.subr.bf16.mxu1 %v3040_v2 }
 0x112   : > { %v2699_v34 = vpop.f32.mrf.mxu1  ;;  %2752 = vmatmul.mubr.msk.bf16.vlgmr.msra.gmra.mxu1 %vm398_vm3, %v3169_v11 }
 0x113   : > { %2763 = vmatprep.mubr.msk.bf16.mxu1 %vm3041_vm2, %v3040_v2 }
 0x114   : > { %v733_v37 = vpop.f32.mrf.mxu1 }
 0x115   : > { %v744_v39 = vpack.c.bf16 %v733_v37, %v730_v31 }
 0x116   : > { %v2700_v41 = vpop.f32.mrf.mxu1 }
 0x117   : > { %2716 = vmatmul.mubr.msk.bf16.gmra.mxu0 %vm264_vm1, %v744_v39  ;;  %2762 = vmatpush3.bf16.msra.mxu1 %v744_v39 }
 0x118   : > { %2745 = vmatprep.mubr.msk.bf16.mxu0 %vm3041_vm2, %v3040_v2  ;;  %2785 = vmatprep.subr.bf16.mxu1 %v3040_v2 }
 0x11a   : > { %2764 = vmatmul.mubr.msk.bf16.vlgmr.msra.gmra.mxu1 %vm398_vm3, %v3169_v11 }
 0x11b   : > { %2786 = vmatpush3.bf16.msra.mxu1 %v3142_v6  ;;  %2787 = vmatprep.mubr.msk.bf16.mxu1 %vm3041_vm2, %v3040_v2  ;;  %v2474_v6 = vld [vmem:[%s3665_s2 + $0x4] sm:$0x3] }
 0x11c   : > { %2791 = vmatprep.subr.bf16.mxu1 %v3040_v2 }
 0x11f   : > { %2746 = vmatmul.mubr.msk.bf16.vlgmr.msra.gmra.mxu0 %vm398_vm3, %v3169_v11 }
 0x120   : > { %2756 = vmatpush3.bf16.msra.mxu0 %v743_v22  ;;  %2757 = vmatprep.mubr.msk.bf16.mxu0 %vm3041_vm2, %v3040_v2 }
 0x121   : > { %2922 = vmatprep.subr.msk.bf16.mxu0 %vm289_vm0, %v2474_v6 }
 0x122   : > { %2788 = vmatmul.mubr.msk.bf16.vlgmr.msra.gmra.mxu1 %vm398_vm3, %v3313_v42 }
 0x123   : > { %2792 = vmatpush3.bf16.msra.mxu1 %v3144_v7  ;;  %2793 = vmatprep.mubr.msk.bf16.mxu1 %vm3041_vm2, %v3040_v2  ;;  %v1250_v7 = vsel %vm289_vm0, %v2474_v6, 0 }
 0x124   : > { %2797 = vmatprep.subr.bf16.mxu1 %v3040_v2 }
 0x127   : > { %2758 = vmatmul.mubr.msk.bf16.vlgmr.msra.gmra.mxu0 %vm398_vm3, %v3169_v11 }
 0x128   : > { %2768 = vmatpush3.bf16.msra.mxu0 %v1250_v7 }
 0x129   : > { %2809 = vmatprep.subr.bf16.mxu0 %v3040_v2 }
 0x12a   : > { %2794 = vmatmul.mubr.msk.bf16.vlgmr.msra.gmra.mxu1 %vm398_vm3, %v3313_v42 }
 0x12b   : > { %2798 = vmatpush3.bf16.msra.mxu1 %v3149_v8  ;;  %2799 = vmatprep.mubr.msk.bf16.mxu1 %vm3041_vm2, %v3040_v2 }
 0x12c   : > { %2803 = vmatprep.subr.bf16.mxu1 %v3040_v2 }
 0x132   : > { %2800 = vmatmul.mubr.msk.bf16.vlgmr.msra.gmra.mxu1 %vm398_vm3, %v3313_v42 }
 0x133   : > { %2804 = vmatpush3.bf16.msra.mxu1 %v3162_v10  ;;  %2805 = vmatprep.mubr.msk.bf16.mxu1 %vm3041_vm2, %v3040_v2  ;;  %v336_v10 = vadd.f32 %v3233_v20, %v3225_v14  ;;  %v331_v20 = vadd.f32 %v3225_v14, %v3248_v29  ;;  %v352_v29 = vadd.f32 %v3253_v32, %v3225_v14 }
 0x134   : > { %2815 = vmatprep.subr.bf16.mxu1 %v3040_v2  ;;  %v347_v32 = vadd.f32 %v3225_v14, %v3265_v40 }
 0x13a   : > { %2806 = vmatmul.mubr.msk.bf16.vlgmr.msra.gmra.mxu1 %vm398_vm3, %v3313_v42 }
 0x13b   : > { %2816 = vmatpush3.bf16.msra.mxu1 %v3132_v4  ;;  %2817 = vmatprep.mubr.msk.bf16.mxu1 %vm3041_vm2, %v3040_v2 }
 0x13c   : > { %2827 = vmatprep.subr.bf16.mxu1 %v3040_v2 }
 0x142   : > { %2818 = vmatmul.mubr.msk.bf16.vlgmr.msra.gmra.mxu1 %vm398_vm3, %v3313_v42 }
 0x143   : > { %2828 = vmatpush3.bf16.msra.mxu1 %v3151_v9  ;;  %2829 = vmatprep.mubr.msk.bf16.mxu1 %vm3041_vm2, %v3040_v2  ;;  %v328_v9 = vadd.f32 %v3225_v14, %v3238_v23 }
 0x144   : > { %2851 = vmatprep.subr.bf16.mxu1 %v3040_v2 }
 0x14a   : > { %2830 = vmatmul.mubr.msk.bf16.vlgmr.msra.gmra.mxu1 %vm398_vm3, %v3313_v42 }
 0x14b   : > { %2853 = vmatprep.mubr.msk.bf16.mxu1 %vm3041_vm2, %v3040_v2 }
 0x1b2   : > { %v921_v4 = vpop.f32.mrf.mxu1 }
 0x1b4   : > { %v2723_v8 = vpop.f32.mrf.mxu1 }
 0x1b6   : > { %v924_v11 = vpop.f32.mrf.mxu1 }
 0x1b7   : > { %v1215_v43 = vpack.c.bf16 %v924_v11, %v921_v4  ;;  %v2705_v44 = vpop.f32.mrf.mxu0 }
 0x1b8   : > { %v3365_v45 = vadd.f32 %v2705_v44, %v336_v10  ;;  %v2724_v46 = vpop.f32.mrf.mxu1 }
 0x1b9   : > { %v808_v47 = vpop.f32.mrf.mxu0  ;;  %2769 = vmatprep.mubr.msk.bf16.mxu0 %vm264_vm1, %v1215_v43 }
 0x1ba   : > { %v3370_v49 = vadd.f32 %v808_v47, %v328_v9  ;;  %v962_v50 = vpop.f32.mrf.mxu1 }
 0x1bb   : > { %v2706_v51 = vpop.f32.mrf.mxu0 }
 0x1bc   : > { %v3374_v52 = vadd.f32 %v2706_v51, %v339_v48  ;;  %v2729_v53 = vpop.f32.mrf.mxu1 }
 0x1bd   : > { %v811_v23 = vpop.f32.mrf.mxu0 }
 0x1be   : > { %v3376_v54 = vadd.f32 %v811_v23, %v331_v20  ;;  %v965_v55 = vpop.f32.mrf.mxu1 }
 0x1bf   : > { %v1216_v56 = vpack.c.bf16 %v965_v55, %v962_v50 }
 0x1c0   : > { %v2730_v57 = vpop.f32.mrf.mxu1 }
 0x1c1   : > { %2770 = vmatmul.mubr.msk.bf16.vlgmr.msra.gmra.mxu0 %vm264_vm1, %v1216_v56 }
 0x1c2   : > { %v1003_v58 = vpop.f32.mrf.mxu1  ;;  %2810 = vmatpush3.bf16.msra.mxu0 %v3130_v3  ;;  %v355_v3 = vadd.f32 %v3263_v38, %v3225_v14 }
 0x1c3   : > { %2821 = vmatprep.subr.bf16.mxu0 %v3040_v2 }
 0x1c4   : > { %v2735_v26 = vpop.f32.mrf.mxu1 }
 0x1c6   : > { %v1006_v59 = vpop.f32.mrf.mxu1 }
 0x1c7   : > { %v1217_v60 = vpack.c.bf16 %v1006_v59, %v1003_v58  ;;  %v2709_v61 = vpop.f32.mrf.mxu0 }
 0x1c8   : > { %v3385_v63 = vadd.f32 %v2709_v61, %v352_v29  ;;  %v2736_v0 = vpop.f32.mrf.mxu1 }
 0x1c9   : > { %v824_v1 = vpop.f32.mrf.mxu0  ;;  %2773 = vmatprep.mubr.msk.bf16.mxu0 %vm264_vm1, %v1217_v60 }
 0x1ca   : > { %v3390_v12 = vadd.f32 %v824_v1, %v344_v62  ;;  %v1044_v13 = vpop.f32.mrf.mxu1 }
 0x1cb   : > { %v2710_v15 = vpop.f32.mrf.mxu0 }
 0x1cc   : > { %v3394_v17 = vadd.f32 %v2710_v15, %v355_v3  ;;  %v2741_v19 = vpop.f32.mrf.mxu1 }
 0x1cd   : > { %v827_v35 = vpop.f32.mrf.mxu0  ;;  %v2494_v19 = vld [vmem:[%s3665_s2 + $0x6] sm:$0x3] }
 0x1ce   : > { %v3396_v22 = vadd.f32 %v827_v35, %v347_v32  ;;  %v1047_v25 = vpop.f32.mrf.mxu1 }
 0x1cf   : > { %v1218_v28 = vpack.c.bf16 %v1047_v25, %v1044_v13  ;;  %v2713_v31 = vpop.f32.mrf.mxu0 }
 0x1d0   : > { %v3399_v34 = vadd.f32 %v2713_v31, %v3228_v16  ;;  %v2742_v38 = vpop.f32.mrf.mxu1 }
 0x1d1   : > { %v840_v37 = vpop.f32.mrf.mxu0  ;;  %2774 = vmatmul.mubr.msk.bf16.gmra.mxu0 %vm264_vm1, %v1218_v28 }
 0x1d2   : > { %v3403_v39 = vadd.f32 %v840_v37, %v3231_v18  ;;  %v1126_v14 = vpop.f32.mrf.mxu1  ;;  %v1739_v37 = vsel %vm289_vm0, %v2494_v19, 0 }
 0x1d3   : > { %v2714_v40 = vpop.f32.mrf.mxu0 }
 0x1d4   : > { %v3406_v41 = vadd.f32 %v2714_v40, %v3236_v21  ;;  %v2753_v6 = vpop.f32.mrf.mxu1 }
 0x1d5   : > { %v843_v7 = vpop.f32.mrf.mxu0 }
 0x1d6   : > { %v3409_v4 = vadd.f32 %v843_v7, %v3241_v24  ;;  %v1129_v8 = vpop.f32.mrf.mxu1 }
 0x1d7   : > { %v2717_v16 = vpop.f32.mrf.mxu0 }
 0x1d8   : > { %v3412_v10 = vadd.f32 %v2717_v16, %v3246_v27  ;;  %v2754_v11 = vpop.f32.mrf.mxu1 }
 0x1d9   : > { %v856_v43 = vpop.f32.mrf.mxu0 }
 0x1da   : > { %v3415_v18 = vadd.f32 %v856_v43, %v3251_v30  ;;  %v1208_v44 = vpop.f32.mrf.mxu1  ;;  %v1220_v30 = vpack.c.bf16 %v1129_v8, %v1126_v14 }
 0x1db   : > { %v2718_v9 = vpop.f32.mrf.mxu0 }
 0x1dc   : > { %v3418_v21 = vadd.f32 %v2718_v9, %v3256_v33  ;;  %v2765_v46 = vpop.f32.mrf.mxu1 }
 0x1dd   : > { %v859_v47 = vpop.f32.mrf.mxu0 }
 0x1de   : > { %v3421_v24 = vadd.f32 %v859_v47, %v3261_v36  ;;  %v1211_v48 = vpop.f32.mrf.mxu1 }
 0x1df   : > { %v1085_v50 = vpop.f32.mrf.mxu0  ;;  %v1222_v62 = vpack.c.bf16 %v1211_v48, %v1208_v44 }
 0x1e0   : > { %v2766_v51 = vpop.f32.mrf.mxu1 }
 0x1e1   : > { %v2747_v27 = vpop.f32.mrf.mxu0 }
 0x1e2   : > { %v1410_v20 = vpop.f32.mrf.mxu1 }
 0x1e3   : > { %v1088_v53 = vpop.f32.mrf.mxu0 }
 0x1e4   : > { %v1219_v23 = vpack.c.bf16 %v1088_v53, %v1085_v50  ;;  %v2789_v55 = vpop.f32.mrf.mxu1 }
 0x1e5   : > { %v2748_v56 = vpop.f32.mrf.mxu0 }
 0x1e6   : > { %2777 = vmatprep.mubr.msk.bf16.mxu0 %vm264_vm1, %v1219_v23  ;;  %v1413_v57 = vpop.f32.mrf.mxu1 }
 0x1e7   : > { %v1167_v33 = vpop.f32.mrf.mxu0  ;;  %2778 = vmatmul.mubr.msk.bf16.gmra.mxu0 %vm264_vm1, %v1220_v30  ;;  %v1704_v58 = vpack.c.bf16 %v1413_v57, %v1410_v20 }
 0x1e8   : > { %v2790_v26 = vpop.f32.mrf.mxu1 }
 0x1e9   : > { %v2759_v36 = vpop.f32.mrf.mxu0  ;;  %2852 = vmatpush3.bf16.msra.mxu1 %v1704_v58 }
 0x1ea   : > { %v1451_v29 = vpop.f32.mrf.mxu1  ;;  %2857 = vmatprep.subr.bf16.mxu1 %v3040_v2 }
 0x1eb   : > { %v1170_v59 = vpop.f32.mrf.mxu0 }
 0x1ec   : > { %v1221_v60 = vpack.c.bf16 %v1170_v59, %v1167_v33  ;;  %v2795_v61 = vpop.f32.mrf.mxu1  ;;  %2854 = vmatmul.mubr.msk.bf16.vlgmr.msra.gmra.mxu1 %vm398_vm3, %v3313_v42 }
 0x1ed   : > { %v2760_v0 = vpop.f32.mrf.mxu0  ;;  %2859 = vmatprep.mubr.msk.bf16.mxu1 %vm3041_vm2, %v3040_v2 }
 0x1ee   : > { %2781 = vmatprep.mubr.msk.bf16.mxu0 %vm264_vm1, %v1221_v60  ;;  %v1454_v1 = vpop.f32.mrf.mxu1 }
 0x1ef   : > { %2782 = vmatmul.mubr.msk.bf16.gmra.mxu0 %vm264_vm1, %v1222_v62  ;;  %v1705_v3 = vpack.c.bf16 %v1454_v1, %v1451_v29 }
 0x1f0   : > { %2811 = vmatprep.mubr.msk.bf16.mxu0 %vm3041_vm2, %v3040_v2  ;;  %v2796_v13 = vpop.f32.mrf.mxu1 }
 0x1f1   : > { %2858 = vmatpush3.bf16.msra.mxu1 %v1705_v3 }
 0x1f2   : > { %v1492_v15 = vpop.f32.mrf.mxu1  ;;  %2863 = vmatprep.subr.bf16.mxu1 %v3040_v2 }
 0x1f4   : > { %v2801_v32 = vpop.f32.mrf.mxu1  ;;  %2860 = vmatmul.mubr.msk.bf16.vlgmr.msra.gmra.mxu1 %vm398_vm3, %v3313_v42 }
 0x1f5   : > { %2865 = vmatprep.mubr.msk.bf16.mxu1 %vm3041_vm2, %v3040_v2 }
 0x1f6   : > { %v1495_v35 = vpop.f32.mrf.mxu1 }
 0x1f7   : > { %2812 = vmatmul.mubr.msk.bf16.vlgmr.msra.gmra.mxu0 %vm398_vm3, %v3313_v42  ;;  %v1706_v25 = vpack.c.bf16 %v1495_v35, %v1492_v15 }
 0x1f8   : > { %2822 = vmatpush3.bf16.msra.mxu0 %v3136_v5  ;;  %2823 = vmatprep.mubr.msk.bf16.mxu0 %vm3041_vm2, %v3040_v2  ;;  %v2802_v28 = vpop.f32.mrf.mxu1 }
 0x1f9   : > { %2923 = vmatprep.subr.msk.bf16.mxu0 %vm289_vm0, %v2494_v19  ;;  %2864 = vmatpush3.bf16.msra.mxu1 %v1706_v25 }
 0x1fa   : > { %v1533_v31 = vpop.f32.mrf.mxu1  ;;  %2869 = vmatprep.subr.bf16.mxu1 %v3040_v2 }
 0x1fc   : > { %v2807_v38 = vpop.f32.mrf.mxu1  ;;  %2866 = vmatmul.mubr.msk.bf16.vlgmr.msra.gmra.mxu1 %vm398_vm3, %v3313_v42 }
 0x1fd   : > { %2871 = vmatprep.mubr.msk.bf16.mxu1 %vm3041_vm2, %v3040_v2 }
 0x1fe   : > { %v1536_v5 = vpop.f32.mrf.mxu1 }
 0x1ff   : > { %2824 = vmatmul.mubr.msk.bf16.vlgmr.msra.gmra.mxu0 %vm398_vm3, %v3313_v42  ;;  %v1707_v14 = vpack.c.bf16 %v1536_v5, %v1533_v31 }
 0x200   : > { %2834 = vmatpush3.bf16.msra.mxu0 %v1739_v37  ;;  %2835 = vmatprep.mubr.msk.bf16.mxu0 %vm264_vm1, %v1704_v58  ;;  %v2808_v40 = vpop.f32.mrf.mxu1 }
 0x201   : > { %2870 = vmatpush3.bf16.msra.mxu1 %v1707_v14  ;;  %2875 = vmatprep.subr.bf16.mxu0 %v3040_v2 }
 0x202   : > { %2881 = vmatprep.subr.bf16.mxu1 %v3040_v2  ;;  %v1615_v6 = vpop.f32.mrf.mxu1 }
 0x204   : > { %2872 = vmatmul.mubr.msk.bf16.vlgmr.msra.gmra.mxu1 %vm398_vm3, %v3313_v42  ;;  %v2819_v7 = vpop.f32.mrf.mxu1 }
 0x205   : > { %2883 = vmatprep.mubr.msk.bf16.mxu1 %vm3041_vm2, %v3040_v2 }
 0x206   : > { %v1618_v8 = vpop.f32.mrf.mxu1 }
 0x207   : > { %2836 = vmatmul.mubr.msk.bf16.vlgmr.msra.gmra.mxu0 %vm264_vm1, %v1705_v3  ;;  %v1709_v11 = vpack.c.bf16 %v1618_v8, %v1615_v6 }
 0x208   : > { %2839 = vmatprep.mubr.msk.bf16.mxu0 %vm264_vm1, %v1706_v25  ;;  %v2820_v16 = vpop.f32.mrf.mxu1 }
 0x209   : > { %2882 = vmatpush3.bf16.msra.mxu1 %v1709_v11 }
 0x20a   : > { %v1697_v43 = vpop.f32.mrf.mxu1  ;;  %2893 = vmatprep.subr.bf16.mxu1 %v3040_v2 }
 0x20c   : > { %v2831_v44 = vpop.f32.mrf.mxu1  ;;  %2884 = vmatmul.mubr.msk.bf16.vlgmr.msra.gmra.mxu1 %vm398_vm3, %v3313_v42 }
 0x20d   : > { %2895 = vmatprep.mubr.msk.bf16.mxu1 %vm3041_vm2, %v3040_v2  ;;  %v2511_v44 = vld [vmem:[%s3665_s2 + $0x8] sm:$0x3] }
 0x20e   : > { %v1700_v9 = vpop.f32.mrf.mxu1 }
 0x20f   : > { %2840 = vmatmul.mubr.msk.bf16.gmra.mxu0 %vm264_vm1, %v1707_v14  ;;  %v3471_v47 = vpack.c.bf16 %v1700_v9, %v1697_v43 }
 0x210   : > { %v2832_v46 = vpop.f32.mrf.mxu1 }
 0x211   : > { %2894 = vmatpush3.bf16.msra.mxu1 %v3471_v47  ;;  %v2217_v46 = vsel %vm289_vm0, %v2511_v44, 0 }
 0x214   : > { %2896 = vmatmul.mubr.msk.bf16.vlgmr.msra.gmra.mxu1 %vm398_vm3, %v3313_v42 }
 0x281   : > { %v2771_v48 = vpop.f32.mrf.mxu0 }
 0x282   : > { %v3477_v50 = vadd.f32 %v2771_v48, %v3365_v45 }
 0x283   : > { %v1286_v51 = vpop.f32.mrf.mxu0 }
 0x284   : > { %v3480_v27 = vadd.f32 %v1286_v51, %v3370_v49 }
 0x285   : > { %v2772_v20 = vpop.f32.mrf.mxu0 }
 0x286   : > { %v3483_v53 = vadd.f32 %v2772_v20, %v3374_v52 }
 0x287   : > { %v1289_v23 = vpop.f32.mrf.mxu0 }
 0x288   : > { %v3486_v55 = vadd.f32 %v1289_v23, %v3376_v54 }
 0x291   : > { %v2775_v30 = vpop.f32.mrf.mxu0 }
 0x292   : > { %v3489_v56 = vadd.f32 %v2775_v30, %v3385_v63 }
 0x293   : > { %v1302_v57 = vpop.f32.mrf.mxu0 }
 0x294   : > { %v3492_v45 = vadd.f32 %v1302_v57, %v3390_v12 }
 0x295   : > { %v2776_v33 = vpop.f32.mrf.mxu0 }
 0x296   : > { %v3495_v49 = vadd.f32 %v2776_v33, %v3394_v17 }
 0x297   : > { %v1305_v58 = vpop.f32.mrf.mxu0 }
 0x298   : > { %v3498_v52 = vadd.f32 %v1305_v58, %v3396_v22 }
 0x2a7   : > { %v2779_v26 = vpop.f32.mrf.mxu0 }
 0x2a8   : > { %v3501_v54 = vadd.f32 %v2779_v26, %v3399_v34 }
 0x2a9   : > { %v1318_v36 = vpop.f32.mrf.mxu0 }
 0x2aa   : > { %v3504_v63 = vadd.f32 %v1318_v36, %v3403_v39 }
 0x2ab   : > { %v2780_v29 = vpop.f32.mrf.mxu0 }
 0x2ac   : > { %v3507_v12 = vadd.f32 %v2780_v29, %v3406_v41  ;;  %v1888_v59 = vpop.f32.mrf.mxu1 }
 0x2ad   : > { %v1321_v60 = vpop.f32.mrf.mxu0 }
 0x2ae   : > { %v3510_v17 = vadd.f32 %v1321_v60, %v3409_v4  ;;  %v2855_v61 = vpop.f32.mrf.mxu1 }
 0x2af   : > { %v2783_v22 = vpop.f32.mrf.mxu0 }
 0x2b0   : > { %v3513_v62 = vadd.f32 %v2783_v22, %v3412_v10  ;;  %v1891_v34 = vpop.f32.mrf.mxu1 }
 0x2b1   : > { %v1334_v0 = vpop.f32.mrf.mxu0  ;;  %v2182_v9 = vpack.c.bf16 %v1891_v34, %v1888_v59 }
 0x2b2   : > { %v3516_v1 = vadd.f32 %v1334_v0, %v3415_v18  ;;  %v2856_v39 = vpop.f32.mrf.mxu1 }
 0x2b3   : > { %v2784_v3 = vpop.f32.mrf.mxu0 }
 0x2b4   : > { %v3519_v41 = vadd.f32 %v2784_v3, %v3418_v21  ;;  %v1929_v13 = vpop.f32.mrf.mxu1 }
 0x2b5   : > { %v1337_v15 = vpop.f32.mrf.mxu0 }
 0x2b6   : > { %v3522_v4 = vadd.f32 %v1337_v15, %v3421_v24  ;;  %v2861_v32 = vpop.f32.mrf.mxu1 }
 0x2b7   : > { %v1574_v19 = vpop.f32.mrf.mxu0 }
 0x2b8   : > { %v1932_v35 = vpop.f32.mrf.mxu1 }
 0x2b9   : > { %v2813_v10 = vpop.f32.mrf.mxu0 }
 0x2ba   : > { %v2862_v25 = vpop.f32.mrf.mxu1 }
 0x2bb   : > { %v1577_v28 = vpop.f32.mrf.mxu0 }
 0x2bc   : > { %v1708_v31 = vpack.c.bf16 %v1577_v28, %v1574_v19  ;;  %v1970_v38 = vpop.f32.mrf.mxu1 }
 0x2bd   : > { %v2814_v18 = vpop.f32.mrf.mxu0 }
 0x2be   : > { %2843 = vmatprep.mubr.msk.bf16.mxu0 %vm264_vm1, %v1708_v31  ;;  %2876 = vmatpush3.bf16.msra.mxu0 %v1708_v31  ;;  %v2867_v37 = vpop.f32.mrf.mxu1 }
 0x2bf   : > { %v1656_v21 = vpop.f32.mrf.mxu0  ;;  %2844 = vmatmul.mubr.msk.bf16.gmra.mxu0 %vm264_vm1, %v1709_v11  ;;  %2887 = vmatprep.subr.bf16.mxu0 %v3040_v2 }
 0x2c0   : > { %v1973_v24 = vpop.f32.mrf.mxu1 }
 0x2c1   : > { %v2825_v5 = vpop.f32.mrf.mxu0  ;;  %v2184_v48 = vpack.c.bf16 %v1973_v24, %v1970_v38 }
 0x2c2   : > { %v2868_v14 = vpop.f32.mrf.mxu1 }
 0x2c3   : > { %v1659_v40 = vpop.f32.mrf.mxu0 }
 0x2c4   : > { %v1710_v6 = vpack.c.bf16 %v1659_v40, %v1656_v21  ;;  %v2011_v7 = vpop.f32.mrf.mxu1 }
 0x2c5   : > { %v2826_v8 = vpop.f32.mrf.mxu0 }
 0x2c6   : > { %2847 = vmatprep.mubr.msk.bf16.mxu0 %vm264_vm1, %v1710_v6  ;;  %v2873_v16 = vpop.f32.mrf.mxu1 }
 0x2c7   : > { %2848 = vmatmul.mubr.msk.bf16.gmra.mxu0 %vm264_vm1, %v3471_v47  ;;  %v2183_v47 = vpack.c.bf16 %v1932_v35, %v1929_v13  ;;  %v2837_v29 = vpop.f32.mrf.mxu0 }
 0x2c8   : > { %2877 = vmatprep.mubr.msk.bf16.mxu0 %vm3041_vm2, %v3040_v2  ;;  %v2014_v43 = vpop.f32.mrf.mxu1 }
 0x2c9   : > { %v2185_v51 = vpack.c.bf16 %v2014_v43, %v2011_v7  ;;  %v1775_v59 = vpop.f32.mrf.mxu0 }
 0x2ca   : > { %v2874_v11 = vpop.f32.mrf.mxu1  ;;  %v1838_v8 = vadd.f32 %v1775_v59, %v3480_v27 }
 0x2cb   : > { %v2838_v60 = vpop.f32.mrf.mxu0 }
 0x2cc   : > { %v1841_v11 = vadd.f32 %v2838_v60, %v3483_v53 }
 0x2cd   : > { %v1778_v61 = vpop.f32.mrf.mxu0 }
 0x2cf   : > { %2878 = vmatmul.mubr.msk.bf16.vlgmr.msra.gmra.mxu0 %vm398_vm3, %v3313_v42  ;;  %v2841_v22 = vpop.f32.mrf.mxu0 }
 0x2d0   : > { %2888 = vmatpush3.bf16.msra.mxu0 %v1710_v6  ;;  %2889 = vmatprep.mubr.msk.bf16.mxu0 %vm3041_vm2, %v3040_v2  ;;  %v2093_v2 = vpop.f32.mrf.mxu1 }
 0x2d1   : > { %2924 = vmatprep.subr.msk.bf16.mxu0 %vm289_vm0, %v2511_v44  ;;  %v1791_v34 = vpop.f32.mrf.mxu0 }
 0x2d2   : > { %v2885_v20 = vpop.f32.mrf.mxu1 }
 0x2d3   : > { %v2842_v0 = vpop.f32.mrf.mxu0 }
 0x2d4   : > { %v2096_v23 = vpop.f32.mrf.mxu1 }
 0x2d5   : > { %v2187_v57 = vpack.c.bf16 %v2096_v23, %v2093_v2  ;;  %v1794_v39 = vpop.f32.mrf.mxu0  ;;  %v1845_v23 = vadd.f32 %v2842_v0, %v3495_v49 }
 0x2d6   : > { %v2886_v30 = vpop.f32.mrf.mxu1 }
 0x2d7   : > { %2890 = vmatmul.mubr.msk.bf16.vlgmr.msra.gmra.mxu0 %vm398_vm3, %v3313_v42 }
 0x2d8   : > { %2900 = vmatpush3.bf16.msra.mxu0 %v2217_v46  ;;  %2901 = vmatprep.mubr.msk.bf16.mxu0 %vm264_vm1, %v2182_v9  ;;  %v2175_v33 = vpop.f32.mrf.mxu1  ;;  %v1839_v9 = vadd.f32 %v1778_v61, %v3486_v55 }
 0x2da   : > { %v2897_v58 = vpop.f32.mrf.mxu1 }
 0x2dc   : > { %v2178_v42 = vpop.f32.mrf.mxu1 }
 0x2dd   : > { %v2189_v36 = vpack.c.bf16 %v2178_v42, %v2175_v33 }
 0x2de   : > { %v2898_v26 = vpop.f32.mrf.mxu1 }
 0x2df   : > { %2902 = vmatmul.mubr.msk.bf16.vlgmr.msra.gmra.mxu0 %vm264_vm1, %v2183_v47  ;;  %v1844_v47 = vadd.f32 %v2841_v22, %v3489_v56 }
 0x2e0   : > { %2905 = vmatprep.mubr.msk.bf16.mxu0 %vm264_vm1, %v2184_v48 }
 0x2e7   : > { %2906 = vmatmul.mubr.msk.bf16.gmra.mxu0 %vm264_vm1, %v2185_v51  ;;  %v1842_v51 = vadd.f32 %v1791_v34, %v3492_v45 }
 0x37f   : > { %v2845_v3 = vpop.f32.mrf.mxu0 }
 0x380   : > { %v3548_v13 = vadd.f32 %v2845_v3, %v3501_v54 }
 0x381   : > { %v1807_v15 = vpop.f32.mrf.mxu0 }
 0x382   : > { %v3551_v32 = vadd.f32 %v1807_v15, %v3504_v63 }
 0x383   : > { %v2846_v19 = vpop.f32.mrf.mxu0 }
 0x384   : > { %v3554_v35 = vadd.f32 %v2846_v19, %v3507_v12 }
 0x385   : > { %v1810_v10 = vpop.f32.mrf.mxu0 }
 0x386   : > { %v3557_v25 = vadd.f32 %v1810_v10, %v3510_v17 }
 0x387   : > { %v2849_v28 = vpop.f32.mrf.mxu0 }
 0x388   : > { %v3560_v31 = vadd.f32 %v2849_v28, %v3513_v62 }
 0x389   : > { %v1823_v38 = vpop.f32.mrf.mxu0 }
 0x38a   : > { %v3563_v54 = vadd.f32 %v1823_v38, %v3516_v1 }
 0x38b   : > { %v2850_v18 = vpop.f32.mrf.mxu0 }
 0x38c   : > { %v3566_v63 = vadd.f32 %v2850_v18, %v3519_v41 }
 0x38d   : > { %v1826_v12 = vpop.f32.mrf.mxu0 }
 0x38e   : > { %v3569_v37 = vadd.f32 %v1826_v12, %v3522_v4  ;;  %v1840_v4 = vadd.f32 %v2837_v29, %v3477_v50 }
 0x38f   : > { %v2052_v17 = vpop.f32.mrf.mxu0 }
 0x391   : > { %v2879_v21 = vpop.f32.mrf.mxu0 }
 0x393   : > { %v2055_v24 = vpop.f32.mrf.mxu0 }
 0x394   : > { %v2186_v5 = vpack.c.bf16 %v2055_v24, %v2052_v17 }
 0x395   : > { %v2880_v62 = vpop.f32.mrf.mxu0 }
 0x396   : > { %2909 = vmatprep.mubr.msk.bf16.mxu0 %vm264_vm1, %v2186_v5 }
 0x397   : > { %v2134_v14 = vpop.f32.mrf.mxu0  ;;  %2910 = vmatmul.mubr.msk.bf16.gmra.mxu0 %vm264_vm1, %v2187_v57  ;;  %v1843_v57 = vadd.f32 %v1794_v39, %v3498_v52 }
 0x399   : > { %v2891_v1 = vpop.f32.mrf.mxu0 }
 0x39b   : > { %v2137_v40 = vpop.f32.mrf.mxu0 }
 0x39c   : > { %v2188_v6 = vpack.c.bf16 %v2137_v40, %v2134_v14 }
 0x39d   : > { %v2892_v41 = vpop.f32.mrf.mxu0 }
 0x39e   : > { %2913 = vmatprep.mubr.msk.bf16.mxu0 %vm264_vm1, %v2188_v6 }
 0x39f   : > { %v2903_v7 = vpop.f32.mrf.mxu0  ;;  %2914 = vmatmul.mubr.msk.bf16.gmra.mxu0 %vm264_vm1, %v2189_v36 }
 0x3a0   : > { %v2318_v16 = vadd.f32 %v2903_v7, %v1840_v4 }
 0x3a1   : > { %v2253_v43 = vpop.f32.mrf.mxu0 }
 0x3a2   : > { %2334 = vst [vmem:[%s3581_s7 + $0x10] sm:$0xff] %v2318_v16  ;;  %v2316_v50 = vadd.f32 %v2253_v43, %v1838_v8 }
 0x3a3   : > { %v2904_v44 = vpop.f32.mrf.mxu0 }
 0x3a4   : > { %2332 = vst [vmem:[%s3581_s7] sm:$0xff] %v2316_v50  ;;  %v2319_v46 = vadd.f32 %v2904_v44, %v1841_v11 }
 0x3a5   : > { %v2256_v27 = vpop.f32.mrf.mxu0 }
 0x3a6   : > { %2335 = vst [vmem:[%s3581_s7 + $0x18] sm:$0xff] %v2319_v46  ;;  %v2317_v53 = vadd.f32 %v2256_v27, %v1839_v9 }
 0x3a7   : > { %v2907_v48 = vpop.f32.mrf.mxu0 }
 0x3a8   : > { %2333 = vst [vmem:[%s3581_s7 + $0x8] sm:$0xff] %v2317_v53  ;;  %v2322_v2 = vadd.f32 %v2907_v48, %v1844_v47 }
 0x3a9   : > { %v2269_v20 = vpop.f32.mrf.mxu0 }
 0x3aa   : > { %2338 = vst [vmem:[%s3581_s7 + $0x30] sm:$0xff] %v2322_v2  ;;  %v2320_v55 = vadd.f32 %v2269_v20, %v1842_v51 }
 0x3ab   : > { %v2908_v30 = vpop.f32.mrf.mxu0 }
 0x3ac   : > { %2336 = vst [vmem:[%s3581_s7 + $0x20] sm:$0xff] %v2320_v55  ;;  %v2323_v56 = vadd.f32 %v2908_v30, %v1845_v23 }
 0x3ad   : > { %v2272_v33 = vpop.f32.mrf.mxu0 }
 0x3ae   : > { %2339 = vst [vmem:[%s3581_s7 + $0x38] sm:$0xff] %v2323_v56  ;;  %v2321_v58 = vadd.f32 %v2272_v33, %v1843_v57 }
 0x3b0   : > { %2337 = vst [vmem:[%s3581_s7 + $0x28] sm:$0xff] %v2321_v58 }
 0x457   : > { %v2911_v45 = vpop.f32.mrf.mxu0 }
 0x458   : > { %v2326_v42 = vadd.f32 %v2911_v45, %v3548_v13 }
 0x459   : > { %v2285_v49 = vpop.f32.mrf.mxu0 }
 0x45a   : > { %2342 = vst [vmem:[%s3581_s7 + $0x50] sm:$0xff] %v2326_v42  ;;  %v2324_v26 = vadd.f32 %v2285_v49, %v3551_v32 }
 0x45b   : > { %v2912_v52 = vpop.f32.mrf.mxu0 }
 0x45c   : > { %2340 = vst [vmem:[%s3581_s7 + $0x40] sm:$0xff] %v2324_v26  ;;  %v2327_v36 = vadd.f32 %v2912_v52, %v3554_v35 }
 0x45d   : > { %v2288_v29 = vpop.f32.mrf.mxu0 }
 0x45e   : > { %2343 = vst [vmem:[%s3581_s7 + $0x58] sm:$0xff] %v2327_v36  ;;  %v2325_v59 = vadd.f32 %v2288_v29, %v3557_v25 }
 0x45f   : > { %v2915_v60 = vpop.f32.mrf.mxu0 }
 0x460   : > { %2341 = vst [vmem:[%s3581_s7 + $0x48] sm:$0xff] %v2325_v59  ;;  %v2330_v61 = vadd.f32 %v2915_v60, %v3560_v31 }
 0x461   : > { %v2301_v22 = vpop.f32.mrf.mxu0 }
 0x462   : > { %2346 = vst [vmem:[%s3581_s7 + $0x70] sm:$0xff] %v2330_v61  ;;  %v2328_v34 = vadd.f32 %v2301_v22, %v3563_v54 }
 0x463   : > { %v2916_v0 = vpop.f32.mrf.mxu0 }
 0x464   : > { %2344 = vst [vmem:[%s3581_s7 + $0x60] sm:$0xff] %v2328_v34  ;;  %v2331_v39 = vadd.f32 %v2916_v0, %v3566_v63 }
 0x465   : > { %v2304_v3 = vpop.f32.mrf.mxu0 }
 0x466   : > { %2347 = vst [vmem:[%s3581_s7 + $0x78] sm:$0xff] %v2331_v39  ;;  %v2329_v13 = vadd.f32 %v2304_v3, %v3569_v37 }
 0x468   : > { %2345 = vst [vmem:[%s3581_s7 + $0x68] sm:$0xff] %v2329_v13 }
 0x469   : > { %2991 = shalt.err (!%p2988_p3)
}
 0x46a   : > { %s2992_s23 = scalar_lea.hbm %s3614_s12, 2048  ;;  %s2996_s29 = scalar_lea.hbm %s3667_s4, 4096 }
 0x46b   : > { %p2993_p4 = scmp.ne.s32.totalorder %s3614_s12, %s2992_s23  ;;  %p2997_p9 = scmp.lt.s32.totalorder %s3614_s12, %s3667_s4 }
 0x46c   : > { %p2998_p10 = scmp.lt.s32.totalorder %s2996_s29, %s2992_s23 }
 0x46d   : > { %p2994_p7 = pnand %p2993_p4, %p3108_p5 }
 0x46e   : > { %p2999_p11 = por %p2998_p10, %p2997_p9 }
 0x46f   : > { %p2995_p8 = pneg %p2994_p7 }
 0x471   : > { %p3000_p12 = pnand %p2999_p11, %p2995_p8 }
 0x473   : > { %3003 = shalt.err (!%p3000_p12)
}
 0x474   : > { %s3043_s6 = smov 128   ;;  %s3044_s7 = smov 8  }
 0x475   : > { %2925 = dma.vmem_to_hbm [thread:$0]  (%p3108_p5), %s3616_s9, 2048, %s3614_s12, %s3623_s19, %s3043_s6, %s3043_s6, %s3044_s7  }
 0x476 PF: > { %p2931_p13 = scmp.ge.s32.totalorder %s3038_s18, 2  ;;  %s2377_s8 = sand.u32 1, %s3026_s15  }
 0x477   : > { %s2378_s10 = scalar_lea.sflag [#allocation3], %s2377_s8 }
 0x478   : > { %p2928_p0 = pnand %p2931_p13, %p3112_p6 }
 0x47a   : > { %p2929_p1 = pneg %p2928_p0 }
 0x47c   : > { %3021 = dma.done.wait (%p2929_p1), %s2378_s10, 2048  }
 0x47d   : > { %3023 = vsyncadd (%p2929_p1), %s2378_s10, 4294965248  ;;  %p14_p2 = scmp.ge.s32.totalorder %s3095_s21, 4   ;;  %s3670_s15 = smov %s3030_s16 }
 0x47e   : > { %s3671_s16 = smov %s3034_s17  ;;  %s3672_s17 = smov %s3106_s24 }
 0x47f   : > { %s3673_s18 = smov %s3095_s21  ;;  %16 = sbr.rel (!%p14_p2) target bundleno = 3 (0x3), region = 76 }
 0x484   :  { %2383 = vsyncpa [#allocation3], 1 }
 0x485   :  { %2385 = vsyncpa [#allocation3 + $0x1], 1 }

</bundles_post_ra>
